<compile_context>
chip_gen: v7x
topology: tpu7x:2x2x1
jax: 0.10.0
libtpu: 0.0.40
codegen_flags: <defaults>
</compile_context>

<pallas_src>
import jax
import jax.numpy as jnp
from jax.experimental import pallas as pl
from jax.experimental.pallas import tpu as pltpu

LANE = 128          # lane-dense classifier width (3 classes padded -> 128)
FEAT = 512          # nn.Linear(512, 3) input dim (feature extractor output)
NEG_INF = -1e30     # f32 bias on padded lanes -> exp underflows to exactly 0.0


def fused_net_kernel(x_ref, w_ref, b_ref, o_ref):
    """probs = softmax(x @ W_fused + b) over the last (padded) dim.

    x_ref: (TB, K)   f32   flattened-input tile (cast to bf16 in-kernel)
    w_ref: (K, 128)  bf16  fused fe_w @ cls_w.T, zero-padded 3 -> 128 lanes
    b_ref: (1, 128)  f32   classifier bias, padded lanes = -1e30
    o_ref: (TB, 128) bf16  softmax probs (only [:, :3] meaningful)
    """
    logits = jnp.dot(x_ref[...].astype(jnp.bfloat16), w_ref[...],
                     preferred_element_type=jnp.float32) + b_ref[...]
    # numerically stable softmax, all f32 on VPU/EUP.
    m = jnp.max(logits, axis=-1, keepdims=True)
    e = jnp.exp(logits - m)                      # padded lanes -> exp(-1e30) = 0
    denom = jnp.sum(e, axis=-1, keepdims=True)
    # approx reciprocal uses the EUP slot; rows sum to 1 within ~1e-3.
    o_ref[...] = (e * pl.reciprocal(denom, approx=True)).astype(o_ref.dtype)


def prepare_params(fe_w, cls_w, cls_b):
    """One-time parameter prep (hoisted out of the per-step forward).

    Folds the classifier Linear(512, 3) into the linear feature-extractor
    stand-in: W_fused = fe_w @ cls_w.T -> (K, 3), padded to a lane-dense
    (K, 128) bf16 MXU operand.  Bias is padded with -1e30 (kept in f32!) so
    padded softmax lanes contribute exactly 0.
    """
    # TODO(synk): this fold is only valid while the injected feature_extractor
    # is a linear projection; a real conv stack needs a separate feature stage.
    num_classes, feat = cls_w.shape
    assert feat == FEAT
    w_fused = jnp.dot(fe_w.astype(jnp.float32),
                      jnp.transpose(cls_w).astype(jnp.float32),
                      preferred_element_type=jnp.float32)              # (K, 3)
    k = w_fused.shape[0]
    w_pad = jnp.zeros((k, LANE), jnp.bfloat16).at[:, :num_classes].set(
        w_fused.astype(jnp.bfloat16))
    b_pad = jnp.full((1, LANE), NEG_INF, jnp.float32).at[0, :num_classes].set(
        cls_b.astype(jnp.float32))
    return w_pad, b_pad


def _round_up(v, m):
    return ((v + m - 1) // m) * m


def _choose_tb(n, k, block_rows):
    """Pick the batch tile size.

    - tb == n for tiny batches (full-dim block satisfies the layout rule)
    - otherwise a multiple of 16 (safe sublane count for the bf16 output)
    - balanced across tiles (bounds ragged-tile waste to < 16 rows)
    - >= 2 grid steps when possible so ("parallel",) uses both v7x cores
    - capped so the double-buffered f32 x tile stays under ~8 MiB
    """
    if n <= 16:
        return n
    cap = max(16, ((8 * 1024 * 1024) // (2 * 4 * k)) // 16 * 16)  # VMEM cap
    cap = min(cap, max(16, _round_up(block_rows, 16)))
    num_tiles = max(2, pl.cdiv(n, cap))
    return max(16, min(cap, _round_up(pl.cdiv(n, num_tiles), 16)))


def net_forward(x, w_fused_pad, bias_pad, *, num_classes=3, block_rows=512):
    """Net.forward: x is NCHW (B, C, H, W) -> (B, num_classes) softmax probs."""
    # TODO(synk): feature_extractor is an externally injected nn.Module; a
    # deterministic linear projection (flatten -> 512) stands in for it and is
    # folded into w_fused_pad by prepare_params().
    n = x.shape[0]
    flat = x.reshape(n, -1)           # row-major flatten; no cast / no pad copy
    k = flat.shape[1]
    assert w_fused_pad.shape == (k, LANE)

    tb = _choose_tb(n, k, block_rows)
    grid = pl.cdiv(n, tb)             # ragged last tile handled by masked block

    out = pl.pallas_call(
        fused_net_kernel,
        out_shape=jax.ShapeDtypeStruct((n, LANE), jnp.bfloat16),
        grid=(grid,),
        in_specs=[
            # x tile: streamed (double-buffered) over the batch grid, f32 in HBM
            pl.BlockSpec((tb, k), lambda i: (i, 0)),
            # fused weight / bias: constant index_map -> DMA'd once, stays in
            # VMEM across grid steps.  Post-fold footprint is only K*128*2B,
            # so the default double buffer costs almost nothing.
            pl.BlockSpec((k, LANE), lambda i: (0, 0)),
            pl.BlockSpec((1, LANE), lambda i: (0, 0)),
        ],
        out_specs=pl.BlockSpec((tb, LANE), lambda i: (i, 0)),
        compiler_params=pltpu.CompilerParams(
            dimension_semantics=("parallel",),        # shard batch across TCs
            vmem_limit_bytes=32 * 1024 * 1024,        # explicit, safe v5e..v7x
        ),
    )(flat, w_fused_pad, bias_pad)

    return out[:, :num_classes]


if __name__ == "__main__":
    key = jax.random.PRNGKey(0)
    k_x, k_fe, k_w, k_b = jax.random.split(key, 4)

    # Small deterministic input, NCHW like PyTorch: batch=2, channels=4, 16x16
    x = jax.random.normal(k_x, (2, 4, 16, 16), dtype=jnp.float32)
    in_dim = 4 * 16 * 16  # 1024

    # Stand-in feature extractor weights (flatten -> 512)
    fe_w = jax.random.normal(k_fe, (in_dim, FEAT), dtype=jnp.float32) * 0.02
    # Classifier nn.Linear(512, 3) in PyTorch layout: weight (out, in), bias (out,)
    cls_w = jax.random.normal(k_w, (3, FEAT), dtype=jnp.float32) * 0.05
    cls_b = jax.random.normal(k_b, (3,), dtype=jnp.float32) * 0.01

    # One-time weight fold / pad (hoisted out of the forward).
    w_fused_pad, bias_pad = prepare_params(fe_w, cls_w, cls_b)

    out = jax.block_until_ready(net_forward(x, w_fused_pad, bias_pad))

    # Reference using the same folded bf16 weights / f32-accumulation path;
    # only the approx reciprocal and the bf16 output cast differ.
    flat = x.reshape(2, -1)
    logits = jnp.dot(flat.astype(jnp.bfloat16), w_fused_pad[:, :3],
                     preferred_element_type=jnp.float32) + cls_b
    ref = jax.nn.softmax(logits, axis=-1)

    out_f32 = out.astype(jnp.float32)
    assert out.shape == (2, 3)
    assert out.dtype == jnp.bfloat16
    assert bool(jnp.all(jnp.isfinite(out_f32)))
    assert jnp.allclose(jnp.sum(out_f32, axis=-1), 1.0, atol=1e-2)
    assert jnp.allclose(out_f32, ref, atol=1e-2)
    print("KERNEL_OK")
</pallas_src>

<mosaic_0001>
module attributes {stable_mosaic.version = 11 : i64} {
  func.func @fused_net_kernel(%arg0: i32, %arg1: memref<2x1024xf32, #tpu.memory_space<vmem>>, %arg2: memref<1024x128xbf16, #tpu.memory_space<vmem>>, %arg3: memref<1x128xf32, #tpu.memory_space<vmem>>, %arg4: memref<2x128xbf16, #tpu.memory_space<vmem>>) attributes {dimension_semantics = [#tpu.dimension_semantics<parallel>], iteration_bounds = array<i64: 1>, scalar_prefetch = 0 : i64, scratch_operands = 0 : i64, tpu.core_type = #tpu.core_type<tc>, window_params = [{transform_indices = @transform_0, window_bounds = array<i64: 2, 1024>}, {pipeline_mode = #tpu.pipeline_mode<synchronous>, transform_indices = @transform_1, window_bounds = array<i64: 1024, 128>}, {pipeline_mode = #tpu.pipeline_mode<synchronous>, transform_indices = @transform_2, window_bounds = array<i64: 1, 128>}, {transform_indices = @transform_3, window_bounds = array<i64: 2, 128>}]} {
    %c0 = arith.constant 0 : index
    %c0_0 = arith.constant 0 : index
    %0 = vector.load %arg1[%c0, %c0_0] : memref<2x1024xf32, #tpu.memory_space<vmem>>, vector<2x1024xf32>
    %1 = arith.truncf %0 : vector<2x1024xf32> to vector<2x1024xbf16>
    %c0_1 = arith.constant 0 : index
    %c0_2 = arith.constant 0 : index
    %2 = vector.load %arg2[%c0_1, %c0_2] : memref<1024x128xbf16, #tpu.memory_space<vmem>>, vector<1024x128xbf16>
    %cst = arith.constant dense<0.000000e+00> : vector<2x128xf32>
    %3 = tpu.matmul %1, %2, %cst {dimension_numbers = #tpu.dot_dimension_numbers<[1], [0], [0], [1], [0, 0, 1, 1], [], []>} : vector<2x1024xbf16>, vector<1024x128xbf16>, vector<2x128xf32> -> vector<2x128xf32>
    %c0_3 = arith.constant 0 : index
    %c0_4 = arith.constant 0 : index
    %4 = vector.load %arg3[%c0_3, %c0_4] : memref<1x128xf32, #tpu.memory_space<vmem>>, vector<1x128xf32>
    %5 = vector.broadcast %4 : vector<1x128xf32> to vector<2x128xf32>
    %6 = arith.addf %3, %5 : vector<2x128xf32>
    %cst_5 = arith.constant dense<0xFF800000> : vector<2xf32>
    %7 = vector.multi_reduction <maximumf>, %6, %cst_5 [1] : vector<2x128xf32> to vector<2xf32>
    %8 = vector.shape_cast %7 : vector<2xf32> to vector<2x1xf32>
    %9 = vector.broadcast %8 : vector<2x1xf32> to vector<2x128xf32>
    %10 = arith.subf %6, %9 : vector<2x128xf32>
    %11 = math.exp %10 : vector<2x128xf32>
    %cst_6 = arith.constant dense<0.000000e+00> : vector<2xf32>
    %12 = vector.multi_reduction <add>, %11, %cst_6 [1] : vector<2x128xf32> to vector<2xf32>
    %13 = vector.shape_cast %12 : vector<2xf32> to vector<2x1xf32>
    %14 = tpu.reciprocal %13 {approx = true} : vector<2x1xf32> -> vector<2x1xf32>
    %15 = vector.broadcast %14 : vector<2x1xf32> to vector<2x128xf32>
    %16 = arith.mulf %11, %15 : vector<2x128xf32>
    %17 = arith.truncf %16 : vector<2x128xf32> to vector<2x128xbf16>
    %c0_7 = arith.constant 0 : index
    %c0_8 = arith.constant 0 : index
    %18 = vector.load %arg4[%c0_7, %c0_8] : memref<2x128xbf16, #tpu.memory_space<vmem>>, vector<2x128xbf16>
    tpu.vector_store %arg4[%c0_7, %c0_8], %17 {strides = array<i32>} : memref<2x128xbf16, #tpu.memory_space<vmem>>, vector<2x128xbf16>,
    return
  }
  func.func @transform_0(%arg0: i32) -> (i32, i32) {
    %c0_i32 = arith.constant 0 : i32
    %c0_i32_0 = arith.constant 0 : i32
    return %arg0, %c0_i32 : i32, i32
  }
  func.func @transform_1(%arg0: i32) -> (i32, i32) {
    %c0_i32 = arith.constant 0 : i32
    %c0_i32_0 = arith.constant 0 : i32
    %c0_i32_1 = arith.constant 0 : i32
    return %c0_i32, %c0_i32_0 : i32, i32
  }
  func.func @transform_2(%arg0: i32) -> (i32, i32) {
    %c0_i32 = arith.constant 0 : i32
    %c0_i32_0 = arith.constant 0 : i32
    %c0_i32_1 = arith.constant 0 : i32
    return %c0_i32, %c0_i32_0 : i32, i32
  }
  func.func @transform_3(%arg0: i32) -> (i32, i32) {
    %c0_i32 = arith.constant 0 : i32
    %c0_i32_0 = arith.constant 0 : i32
    return %arg0, %c0_i32 : i32, i32
  }
}

</mosaic_0001>

<bundles_post_ra>
// kernel: tpu_custom_call.1
= control target key start
LH: loop header
LB: loop body
LE: loop exit
PB: predicated region body
PF: predicated region fallthrough
CT: control target
= control target key end

     0   :  { %8 = vsyncpa [#allocation3], 0  ;;  %s1184_s0 = inlined_call_operand.hbm [shape: f32[2,1024], index: 0, kind: input, shape index: {}]   ;;  %s1185_s1 = inlined_call_operand.hbm [shape: bf16[1024,128], index: 1, kind: input, shape index: {}]   ;;  %s1186_s2 = inlined_call_operand.vmem [shape: f32[1,128], index: 2, kind: input, shape index: {}]   ;;  %s1187_s3 = inlined_call_operand.hbm [shape: bf16[2,128], index: 3, kind: output, shape index: {}]  }
   0x1   :  { %9 = vsyncpa [#allocation6], 0 }
   0x2   :  { %10 = vsyncpa [#allocation4], 0  ;;  %s1106_s12 = smov [#allocation2]   ;;  %s1107_s14 = smov [#allocation5]  }
   0x3   :  { %s17_s13 = sshll.u32 %s1106_s12, 4  ;;  %s26_s15 = sshll.u32 %s1107_s14, 4  ;;  %s18_s13 = int_to_ptr.vmem [resolvable:$true] %s17_s13  ;;  %s1132_s15 = int_to_ptr.vmem [resolvable:$true] %s26_s15 }
   0x4   :  { %s1034_s18 = scalar_lea.hbm %s1184_s0, 256 }
   0x5   :  { %p1035_p0 = scmp.ne.s32.totalorder %s1184_s0, %s1034_s18  ;;  %p1038_p1 = scmp.lt.u32.totalorder %s1034_s18, %s1184_s0 }
   0x7   :  { %p1040_p2 = pnand %p1038_p1, %p1035_p0 }
   0x9   :  { %1043 = shalt.err (!%p1040_p2)
}
   0xa   :  { %s1044_s23 = scalar_lea.vmem %s18_s13, 256  ;;  %p1049_p4 = scmp.lt.s32.totalorder %s18_s13, %s18_s13 }
   0xb   :  { %p1045_p3 = scmp.ne.s32.totalorder %s18_s13, %s1044_s23  ;;  %p1050_p5 = scmp.lt.s32.totalorder %s1044_s23, %s1044_s23 }
   0xd   :  { %p1051_p6 = por %p1050_p5, %p1049_p4 }
   0xf   :  { %p1052_p7 = pnand %p1051_p6, %p1045_p3 }
  0x11   :  { %1055 = shalt.err (!%p1052_p7)
}
  0x12   :  { %20 = dma.hbm_to_vmem [thread:$0]  %s1184_s0, 256, %s18_s13, [#allocation3]  }
  0x13   :  { %s1056_s28 = scalar_lea.hbm %s1185_s1, 8192 }
  0x14   :  { %p1057_p8 = scmp.ne.s32.totalorder %s1185_s1, %s1056_s28  ;;  %p1060_p9 = scmp.lt.u32.totalorder %s1056_s28, %s1185_s1 }
  0x16   :  { %p1062_p10 = pnand %p1060_p9, %p1057_p8 }
  0x18   :  { %1065 = shalt.err (!%p1062_p10)
}
  0x19   :  { %s1066_s6 = scalar_lea.vmem %s1132_s15, 8192  ;;  %p1071_p12 = scmp.lt.s32.totalorder %s1132_s15, %s1132_s15 }
  0x1a   :  { %p1067_p11 = scmp.ne.s32.totalorder %s1132_s15, %s1066_s6  ;;  %p1072_p13 = scmp.lt.s32.totalorder %s1066_s6, %s1066_s6 }
  0x1c   :  { %p1073_p0 = por %p1072_p13, %p1071_p12 }
  0x1e   :  { %p1074_p1 = pnand %p1073_p0, %p1067_p11 }
  0x20   :  { %1077 = shalt.err (!%p1074_p1)
}
  0x21   :  { %s1108_s0 = smov 64   ;;  %s1109_s7 = smov 4  }
  0x22   :  { %32 = dma.hbm_to_vmem [thread:$0]  %s1185_s1, 8192, %s1132_s15, [#allocation6], %s1108_s0, %s1108_s0, %s1109_s7  }
  0x23   :  { %1100 = dma.done.wait [#allocation3], 256  }
  0x24   :  { %1101 = vsyncadd [#allocation3], 4294967040 }
  0x25   :  { %1102 = dma.done.wait [#allocation6], 8192  }
  0x26   :  { %1103 = vsyncadd [#allocation6], 4294959104  ;;  %v964_v0 = vld [vmem:[#allocation5 + $0x40] sm:$0xff]   ;;  %v968_v4 = vld [vmem:[#allocation5 + $0x48] sm:$0xff]   ;;  %v1110_v22 = vmov 1983009808   ;;  %v50_v24 = vlaneseq }
  0x27   :  { %v965_v1 = vld [vmem:[#allocation5 + $0xc0] sm:$0xff]   ;;  %870 = vmatprep.subr.bf16.mxu0 %v964_v0  ;;  %v969_v5 = vld [vmem:[#allocation5 + $0xc8] sm:$0xff]   ;;  %v972_v8 = vld [vmem:[#allocation5 + $0x50] sm:$0xff]   ;;  %v48_v23 = vunpack.c.l.s4 %v1110_v22  ;;  %vm775_vm0 = vcmask 1041408  }
  0x28   :  { %v966_v2 = vld [vmem:[#allocation5] sm:$0xff]   ;;  %892 = vmatprep.subr.bf16.mxu1 %v965_v1  ;;  %v970_v6 = vld [vmem:[#allocation5 + $0x8] sm:$0xff]   ;;  %v973_v9 = vld [vmem:[#allocation5 + $0xd0] sm:$0xff]   ;;  %v51_v30 = vshrl.u32 %v50_v24, 7 }
  0x29   :  { %v967_v3 = vld [vmem:[#allocation5 + $0x80] sm:$0xff]   ;;  %871 = vmatpush3.bf16.msra.mxu0 %v966_v2  ;;  %v971_v7 = vld [vmem:[#allocation5 + $0x88] sm:$0xff]   ;;  %v974_v10 = vld [vmem:[#allocation5 + $0x10] sm:$0xff]   ;;  %v49_v29 = vunpack.c.0.s8 %v48_v23 }
  0x2a   :  { %893 = vmatpush3.bf16.msra.mxu1 %v967_v3  ;;  %872 = vmatprep.subr.bf16.mxu0 %v968_v4  ;;  %v975_v11 = vld [vmem:[#allocation5 + $0x90] sm:$0xff]   ;;  %v976_v12 = vld [vmem:[#allocation5 + $0x58] sm:$0xff]   ;;  %v980_v16 = vld [vmem:[#allocation5 + $0x60] sm:$0xff]  }
  0x2b   :  { %894 = vmatprep.subr.bf16.mxu1 %v969_v5  ;;  %v977_v13 = vld [vmem:[#allocation5 + $0xd8] sm:$0xff]   ;;  %v981_v17 = vld [vmem:[#allocation5 + $0xe0] sm:$0xff]   ;;  %v984_v20 = vld [vmem:[#allocation5 + $0x68] sm:$0xff]   ;;  %v1163_v35 = vsub.s32 %v49_v29, %v51_v30 }
  0x2c   :  { %v978_v14 = vld [vmem:[#allocation5 + $0x18] sm:$0xff]   ;;  %v982_v18 = vld [vmem:[#allocation5 + $0x20] sm:$0xff]   ;;  %v985_v21 = vld [vmem:[#allocation5 + $0xe8] sm:$0xff]  }
  0x2d   :  { %873 = vmatpush3.bf16.msra.mxu0 %v970_v6  ;;  %v979_v15 = vld [vmem:[#allocation5 + $0x98] sm:$0xff]   ;;  %v983_v19 = vld [vmem:[#allocation5 + $0xa0] sm:$0xff]   ;;  %v986_v25 = vld [vmem:[#allocation5 + $0x28] sm:$0xff]  }
  0x2e   :  { %895 = vmatpush3.bf16.msra.mxu1 %v971_v7  ;;  %874 = vmatprep.subr.bf16.mxu0 %v972_v8  ;;  %v987_v26 = vld [vmem:[#allocation5 + $0xa8] sm:$0xff]   ;;  %v988_v27 = vld [vmem:[#allocation5 + $0x70] sm:$0xff]   ;;  %v992_v33 = vld [vmem:[#allocation5 + $0x78] sm:$0xff]  }
  0x2f   :  { %896 = vmatprep.subr.bf16.mxu1 %v973_v9  ;;  %v989_v28 = vld [vmem:[#allocation5 + $0xf0] sm:$0xff]   ;;  %v993_v34 = vld [vmem:[#allocation5 + $0xf8] sm:$0xff]   ;;  %v997_v41 = vld [vmem:[#allocation5 + $0x140] sm:$0xff]  }
  0x30   :  { %v990_v31 = vld [vmem:[#allocation5 + $0x30] sm:$0xff]   ;;  %v994_v36 = vld [vmem:[#allocation5 + $0x38] sm:$0xff]   ;;  %v998_v42 = vld [vmem:[#allocation5 + $0x1c0] sm:$0xff]  }
  0x31   :  { %875 = vmatpush3.bf16.msra.mxu0 %v974_v10  ;;  %v991_v32 = vld [vmem:[#allocation5 + $0xb0] sm:$0xff]   ;;  %v995_v37 = vld [vmem:[#allocation5 + $0xb8] sm:$0xff]   ;;  %v999_v48 = vld [vmem:[#allocation5 + $0x100] sm:$0xff]  }
  0x32   :  { %897 = vmatpush3.bf16.msra.mxu1 %v975_v11  ;;  %876 = vmatprep.subr.bf16.mxu0 %v976_v12  ;;  %v42_v38 = vld [vmem:[#allocation2] sm:$0xff]  ;;  %v1001_v50 = vld [vmem:[#allocation5 + $0x148] sm:$0xff]   ;;  %v1000_v52 = vld [vmem:[#allocation5 + $0x180] sm:$0xff]  }
  0x33   :  { %898 = vmatprep.subr.bf16.mxu1 %v977_v13  ;;  %v53_v39 = vrot.slane %v42_v38, %v1163_v35  ;;  %v46_v40 = vcombine.high %v42_v38, %v42_v38  ;;  %v1002_v53 = vld [vmem:[#allocation5 + $0x1c8] sm:$0xff]   ;;  %v1005_v55 = vld [vmem:[#allocation5 + $0x150] sm:$0xff]   ;;  %v1009_v59 = vld [vmem:[#allocation5 + $0x158] sm:$0xff]  }
  0x34   :  { %v1003_v54 = vld [vmem:[#allocation5 + $0x108] sm:$0xff]   ;;  %v1006_v57 = vld [vmem:[#allocation5 + $0x1d0] sm:$0xff]   ;;  %v1010_v61 = vld [vmem:[#allocation5 + $0x1d8] sm:$0xff]  }
  0x35   :  { %877 = vmatpush3.bf16.msra.mxu0 %v978_v14  ;;  %v61_v43 = vcombine.high %v53_v39, %v53_v39  ;;  %v60_v44 = vrot.slane %v46_v40, %v1163_v35  ;;  %v88_v45 = vpack.c.bf16 %v53_v39, %v53_v39  ;;  %v1004_v56 = vld [vmem:[#allocation5 + $0x188] sm:$0xff]   ;;  %v1007_v58 = vld [vmem:[#allocation5 + $0x110] sm:$0xff]   ;;  %v1011_v62 = vld [vmem:[#allocation5 + $0x118] sm:$0xff]  }
  0x36   :  { %899 = vmatpush3.bf16.msra.mxu1 %v979_v15  ;;  %878 = vmatprep.subr.bf16.mxu0 %v980_v16  ;;  %v1008_v60 = vld [vmem:[#allocation5 + $0x190] sm:$0xff]   ;;  %v1013_v63 = vld [vmem:[#allocation5 + $0x160] sm:$0xff]   ;;  %v1012_v0 = vld [vmem:[#allocation5 + $0x198] sm:$0xff]  }
  0x37   :  { %900 = vmatprep.subr.bf16.mxu1 %v981_v17  ;;  %v89_v46 = vpack.c.bf16 %v61_v43, %v61_v43  ;;  %v62_v47 = vcombine.high %v60_v44, %v60_v44  ;;  %v90_v49 = vpack.c.bf16 %v60_v44, %v60_v44  ;;  %v1014_v1 = vld [vmem:[#allocation5 + $0x1e0] sm:$0xff]   ;;  %v1017_v3 = vld [vmem:[#allocation5 + $0x168] sm:$0xff]   ;;  %v1021_v7 = vld [vmem:[#allocation5 + $0x170] sm:$0xff]  }
  0x38   :  { %v1015_v2 = vld [vmem:[#allocation5 + $0x120] sm:$0xff]   ;;  %v1018_v5 = vld [vmem:[#allocation5 + $0x1e8] sm:$0xff]   ;;  %v1022_v9 = vld [vmem:[#allocation5 + $0x1f0] sm:$0xff]  }
  0x39   :  { %879 = vmatpush3.bf16.msra.mxu0 %v982_v18  ;;  %647 = vmatprep.mubr.bf16.mxu0 %v89_v46  ;;  %v91_v51 = vpack.c.bf16 %v62_v47, %v62_v47  ;;  %v1016_v4 = vld [vmem:[#allocation5 + $0x1a0] sm:$0xff]   ;;  %v1019_v6 = vld [vmem:[#allocation5 + $0x128] sm:$0xff]   ;;  %v1023_v10 = vld [vmem:[#allocation5 + $0x130] sm:$0xff]  }
  0x3a   :  { %901 = vmatpush3.bf16.msra.mxu1 %v983_v19  ;;  %880 = vmatprep.subr.bf16.mxu0 %v984_v20  ;;  %v1020_v8 = vld [vmem:[#allocation5 + $0x1a8] sm:$0xff]   ;;  %v1025_v11 = vld [vmem:[#allocation5 + $0x178] sm:$0xff]   ;;  %v1024_v12 = vld [vmem:[#allocation5 + $0x1b0] sm:$0xff]  }
  0x3b   :  { %902 = vmatprep.subr.bf16.mxu1 %v985_v21  ;;  %687 = vmatprep.mubr.bf16.mxu1 %v91_v51  ;;  %v1026_v13 = vld [vmem:[#allocation5 + $0x1f8] sm:$0xff]  }
  0x3c   :  { %v43_v14 = vld [vmem:[#allocation2 + $0x8] sm:$0xff] }
  0x3d   :  { %881 = vmatpush3.bf16.msra.mxu0 %v986_v25  ;;  %v1027_v15 = vld [vmem:[#allocation5 + $0x138] sm:$0xff]   ;;  %v70_v16 = vrot.slane %v43_v14, %v1163_v35  ;;  %v63_v17 = vcombine.high %v43_v14, %v43_v14 }
  0x3e   :  { %903 = vmatpush3.bf16.msra.mxu1 %v987_v26  ;;  %882 = vmatprep.subr.bf16.mxu0 %v988_v27  ;;  %v1028_v18 = vld [vmem:[#allocation5 + $0x1b8] sm:$0xff]   ;;  %v805_v27 = vld [vmem:[%s1186_s2] ss:$0 sm:$0xff]  ;;  %s1111_s2 = smov [#allocation7]  }
  0x3f   :  { %904 = vmatprep.subr.bf16.mxu1 %v989_v28  ;;  %v78_v19 = vcombine.high %v70_v16, %v70_v16  ;;  %v77_v20 = vrot.slane %v63_v17, %v1163_v35  ;;  %v92_v21 = vpack.c.bf16 %v70_v16, %v70_v16  ;;  %s795_s11 = sshll.u32 %s1111_s2, 4  ;;  %s796_s11 = int_to_ptr.vmem [resolvable:$true] %s795_s11 }
  0x40   :  { %s1078_s12 = scalar_lea.vmem %s796_s11, 16  ;;  %s1082_s13 = scalar_lea.vmem %s796_s11, 32 }
  0x41   :  { %883 = vmatpush3.bf16.msra.mxu0 %v990_v31  ;;  %v93_v22 = vpack.c.bf16 %v78_v19, %v78_v19  ;;  %v79_v23 = vcombine.high %v77_v20, %v77_v20  ;;  %v94_v24 = vpack.c.bf16 %v77_v20, %v77_v20  ;;  %p1079_p2 = scmp.ne.s32.totalorder %s796_s11, %s1078_s12  ;;  %p1083_p3 = scmp.lt.s32.totalorder %s796_s11, %s796_s11 }
  0x42   :  { %905 = vmatpush3.bf16.msra.mxu1 %v991_v32  ;;  %884 = vmatprep.subr.bf16.mxu0 %v992_v33  ;;  %p1084_p4 = scmp.lt.s32.totalorder %s1082_s13, %s1078_s12 }
  0x43   :  { %906 = vmatprep.subr.bf16.mxu1 %v993_v34  ;;  %v95_v25 = vpack.c.bf16 %v79_v23, %v79_v23 }
  0x44   :  { %p1085_p5 = por %p1084_p4, %p1083_p3 }
  0x45   :  { %885 = vmatpush3.bf16.msra.mxu0 %v994_v36 }
  0x46   :  { %907 = vmatpush3.bf16.msra.mxu1 %v995_v37  ;;  %914 = vmatprep.subr.bf16.mxu0 %v997_v41  ;;  %p1086_p6 = pnand %p1085_p5, %p1079_p2 }
  0x47   :  { %936 = vmatprep.subr.bf16.mxu1 %v998_v42 }
  0x48   :  { %648 = vmatmul.mubr.bf16.vlgmr.msra.gmra.mrb[0].mxu0 %v88_v45 }
  0x49   :  { %915 = vmatpush3.bf16.msra.mxu0 %v999_v48  ;;  %688 = vmatmul.mubr.bf16.vlgmr.msra.gmra.mrb[0].mxu1 %v90_v49 }
  0x4a   :  { %916 = vmatprep.subr.bf16.mxu0 %v1001_v50  ;;  %937 = vmatpush3.bf16.msra.mxu1 %v1000_v52 }
  0x4b   :  { %938 = vmatprep.subr.bf16.mxu1 %v1002_v53  ;;  %727 = vmatprep.mubr.bf16.mxu0 %v93_v22 }
  0x4c   :  { %767 = vmatprep.mubr.bf16.mxu1 %v95_v25 }
  0x4d   :  { %917 = vmatpush3.bf16.msra.mxu0 %v1003_v54 }
  0x4e   :  { %918 = vmatprep.subr.bf16.mxu0 %v1005_v55  ;;  %939 = vmatpush3.bf16.msra.mxu1 %v1004_v56 }
  0x4f   :  { %940 = vmatprep.subr.bf16.mxu1 %v1006_v57 }
  0x51   :  { %919 = vmatpush3.bf16.msra.mxu0 %v1007_v58 }
  0x52   :  { %920 = vmatprep.subr.bf16.mxu0 %v1009_v59  ;;  %941 = vmatpush3.bf16.msra.mxu1 %v1008_v60 }
  0x53   :  { %942 = vmatprep.subr.bf16.mxu1 %v1010_v61 }
  0x55   :  { %921 = vmatpush3.bf16.msra.mxu0 %v1011_v62 }
  0x56   :  { %922 = vmatprep.subr.bf16.mxu0 %v1013_v63  ;;  %943 = vmatpush3.bf16.msra.mxu1 %v1012_v0 }
  0x57   :  { %944 = vmatprep.subr.bf16.mxu1 %v1014_v1 }
  0x59   :  { %923 = vmatpush3.bf16.msra.mxu0 %v1015_v2 }
  0x5a   :  { %924 = vmatprep.subr.bf16.mxu0 %v1017_v3  ;;  %945 = vmatpush3.bf16.msra.mxu1 %v1016_v4 }
  0x5b   :  { %946 = vmatprep.subr.bf16.mxu1 %v1018_v5 }
  0x5d   :  { %925 = vmatpush3.bf16.msra.mxu0 %v1019_v6 }
  0x5e   :  { %926 = vmatprep.subr.bf16.mxu0 %v1021_v7  ;;  %947 = vmatpush3.bf16.msra.mxu1 %v1020_v8 }
  0x5f   :  { %948 = vmatprep.subr.bf16.mxu1 %v1022_v9 }
  0x61   :  { %927 = vmatpush3.bf16.msra.mxu0 %v1023_v10 }
  0x62   :  { %928 = vmatprep.subr.bf16.mxu0 %v1025_v11  ;;  %949 = vmatpush3.bf16.msra.mxu1 %v1024_v12 }
  0x63   :  { %950 = vmatprep.subr.bf16.mxu1 %v1026_v13 }
  0x65   :  { %929 = vmatpush3.bf16.msra.mxu0 %v1027_v15 }
  0x66   :  { %951 = vmatpush3.bf16.msra.mxu1 %v1028_v18 }
  0x68   :  { %728 = vmatmul.mubr.bf16.vlgmr.msra.gmra.mrb[4].mxu0 %v92_v21 }
  0x69   :  { %768 = vmatmul.mubr.bf16.vlgmr.msra.gmra.mrb[4].mxu1 %v94_v24 }
 0x11b   :  { %v886_v26 = vpop.f32.mrb[0].mxu0 }
 0x11c   :  { %v887_v28 = vpop.f32.mrb[1].mxu0  ;;  %v908_v29 = vpop.f32.mrb[0].mxu1 }
 0x11d   :  { %v888_v30 = vadd.f32 %v887_v28, %v886_v26  ;;  %v889_v31 = vpop.f32.mrb[2].mxu0  ;;  %v909_v32 = vpop.f32.mrb[1].mxu1 }
 0x11e   :  { %v890_v33 = vpop.f32.mrb[3].mxu0  ;;  %v910_v35 = vadd.f32 %v909_v32, %v908_v29  ;;  %v911_v36 = vpop.f32.mrb[2].mxu1 }
 0x11f   :  { %v650_v34 = vadd.f32 %v888_v30, %v805_v27  ;;  %v912_v37 = vpop.f32.mrb[3].mxu1 }
 0x121   :  { %v690_v38 = vadd.f32 %v910_v35, %v650_v34 }
 0x13b   :  { %v930_v39 = vpop.f32.mrb[4].mxu0 }
 0x13c   :  { %v931_v40 = vpop.f32.mrb[5].mxu0  ;;  %v952_v41 = vpop.f32.mrb[4].mxu1 }
 0x13d   :  { %v932_v42 = vadd.f32 %v931_v40, %v930_v39  ;;  %v933_v43 = vpop.f32.mrb[6].mxu0  ;;  %v953_v44 = vpop.f32.mrb[5].mxu1 }
 0x13e   :  { %v934_v45 = vpop.f32.mrb[7].mxu0  ;;  %v954_v47 = vadd.f32 %v953_v44, %v952_v41  ;;  %v955_v48 = vpop.f32.mrb[6].mxu1 }
 0x13f   :  { %v730_v46 = vadd.f32 %v932_v42, %v690_v38  ;;  %v956_v49 = vpop.f32.mrb[7].mxu1 }
 0x141   :  { %v770_v50 = vadd.f32 %v954_v47, %v730_v46 }
 0x143   :  { %v776_v51 = vsel %vm775_vm0, %v770_v50, -inf }
 0x144   :  { %777 = vmax.xlane.f32.xlu0 %v776_v51 }
 0x1d1   :  { %v778_v52 = vpop.xlane.xlu0 %777 }
 0x1d2   :  { %v779_v53 = vsub.f32 %v770_v50, %v778_v52 }
 0x1d4   :  { %v780_v54 = vmul.f32 1.442695, %v779_v53 }
 0x1d6   :  { %1030 = vpow2.f32 %v780_v54 }
 0x1e0   :  { %v1031_v55 = vpop.eup %1030 }
 0x1e1   :  { %v782_v56 = vsel %vm775_vm0, %v1031_v55, 0.0 }
 0x1e2   :  { %783 = vadd.xlane.f32.xlu0 %v782_v56 }
 0x26f   :  { %v784_v57 = vpop.xlane.xlu0 %783 }
 0x270   :  { %1032 = vrcp.f32 %v784_v57 }
 0x27a   :  { %v1033_v58 = vpop.eup %1032 }
 0x27b   :  { %v786_v59 = vmul.f32 %v1033_v58, %v1031_v55 }
 0x27d   :  { %v787_v60 = vpack.c.bf16 %v786_v59, %v786_v59 }
 0x27f   :  { %788 = vst [vmem:[#allocation7] sm:$0x1] %v787_v60 }
 0x280   :  { %1089 = shalt.err (!%p1086_p6)
}
 0x281   :  { %s1090_s16 = scalar_lea.hbm %s1187_s3, 16 }
 0x282   :  { %p1091_p7 = scmp.ne.s32.totalorder %s1187_s3, %s1090_s16  ;;  %p1094_p8 = scmp.lt.u32.totalorder %s1090_s16, %s1187_s3 }
 0x284   :  { %p1096_p9 = pnand %p1094_p8, %p1091_p7 }
 0x286   :  { %1099 = shalt.err (!%p1096_p9)
}
 0x287   :  { %798 = dma.vmem_to_hbm [thread:$0]  %s796_s11, 16, %s1187_s3, [#allocation4]  }
 0x288   :  { %1104 = dma.done.wait [#allocation4], 16  }
 0x289   :  { %1105 = vsyncadd [#allocation4], 4294967280 }
 0x28a   :  { %802 = vsyncpa [#allocation3], 1 }
 0x28b   :  { %803 = vsyncpa [#allocation6], 1 }
 0x28c   :  { %804 = vsyncpa [#allocation4], 1 }

</bundles_post_ra>
